<compile_context>
chip_gen: v7x
topology: tpu7x:2x2x1
jax: 0.10.0
libtpu: 0.0.40
codegen_flags: <defaults>
</compile_context>

<pallas_src>
import functools
import math

import jax
import jax.numpy as jnp
from jax import lax
from jax.experimental import pallas as pl
from jax.experimental.pallas import tpu as pltpu


_LANES = 128
_LOGITS_TILE_BYTES = 1 * 1024 * 1024  # per-buffer logits budget (safe on v5e/v6e/v7x)


def _choose_tile_hw(hw: int, c: int) -> int:
    """Pixels per grid step along the lane axis: multiple of 128, or full HW."""
    t = max(_LANES, (_LOGITS_TILE_BYTES // (4 * c)) // _LANES * _LANES)
    if hw <= t:
        return hw          # single full-extent block along H*W (always legal)
    return t               # multiple of 128; partial last block handled by Pallas


def _abce_pixel_kernel(x_ref, t_ref, w_ref, loss_ref, prob_ref, *, ignore_index):
    """Per-pixel CE loss (reduction='none') + softmax prob of the target class.

    Blocks: x_ref (1, C, T) logits; t_ref (1, 1, T) int32 targets;
    w_ref (1, C, 1) per-class weights; outputs (1, 1, T) f32.
    Pixels are on lanes (T), classes on sublanes (C).
    """
    x = x_ref[0].astype(jnp.float32)                       # (C, T)
    t = t_ref[0]                                           # (1, T) int32
    w = w_ref[0]                                           # (C, 1) f32

    t_safe = jnp.where(t == ignore_index, 0, t)            # torch tmp_target: ignored -> class 0

    # Numerically stable log-sum-exp over the (small) class / sublane axis.
    m = jnp.max(x, axis=0, keepdims=True)                                  # (1, T)
    lse = jnp.log(jnp.sum(jnp.exp(x - m), axis=0, keepdims=True)) + m      # (1, T)

    # One-hot "gather" of the target class (no dynamic gather on TPU).
    cls = lax.broadcasted_iota(jnp.int32, x.shape, 0)      # (C, T)
    onehot = (cls == t_safe).astype(jnp.float32)           # (C, T)
    x_t = jnp.sum(x * onehot, axis=0, keepdims=True)       # (1, T) logit at target
    w_t = jnp.sum(w * onehot, axis=0, keepdims=True)       # (1, T) weight at target

    valid = (t != ignore_index).astype(jnp.float32)        # (1, T)
    loss_ref[0] = (lse - x_t) * w_t * valid                # == F.cross_entropy(..., 'none')
    prob_ref[0] = jnp.exp(x_t - lse)                       # softmax prob of (tmp_)target class


def _ce_prob_pallas(predict, target, weight, ignore_index):
    """Returns flat per-pixel (loss, prob), each (N*H*W,) float32."""
    N, C, H, W = predict.shape
    HW = H * W

    x = predict.reshape(N, C, HW)                          # free reshape, native NCHW layout
    t = target.reshape(N, 1, HW).astype(jnp.int32)
    w = (jnp.ones((C,), jnp.float32) if weight is None
         else jnp.asarray(weight, jnp.float32)).reshape(1, C, 1)

    tile = _choose_tile_hw(HW, C)
    grid = (N, pl.cdiv(HW, tile))

    kernel = functools.partial(_abce_pixel_kernel, ignore_index=int(ignore_index))

    loss, prob = pl.pallas_call(
        kernel,
        out_shape=(jax.ShapeDtypeStruct((N, 1, HW), jnp.float32),
                   jax.ShapeDtypeStruct((N, 1, HW), jnp.float32)),
        grid_spec=pltpu.PrefetchScalarGridSpec(
            num_scalar_prefetch=0,
            grid=grid,
            in_specs=[
                pl.BlockSpec((1, C, tile), lambda n, h: (n, 0, h)),   # logits (pixels on lanes)
                pl.BlockSpec((1, 1, tile), lambda n, h: (n, 0, h)),   # targets (lane-dense)
                pl.BlockSpec((1, C, 1), lambda n, h: (0, 0, 0)),      # class weights (resident)
            ],
            out_specs=(
                pl.BlockSpec((1, 1, tile), lambda n, h: (n, 0, h)),
                pl.BlockSpec((1, 1, tile), lambda n, h: (n, 0, h)),
            ),
        ),
        compiler_params=pltpu.CompilerParams(
            dimension_semantics=("parallel", "parallel")),
    )(x, t, w)

    return loss.reshape(-1), prob.reshape(-1)


# ---------------------------------------------------------------------------
# abCE_loss module port (threshold schedule + bootstrapped selection in JAX)
# ---------------------------------------------------------------------------

def _log_rampup(current, rampup_length):
    # Standard `log_rampup` from the CCT `ramps` module (external, re-implemented).
    if rampup_length == 0:
        return 1.0
    current = max(0.0, min(float(current), float(rampup_length)))
    return 1.0 - math.exp(-5.0 * current / rampup_length)


_RAMPS = {"log_rampup": _log_rampup}


class AbCELoss:
    """JAX/Pallas port of abCE_loss (annealed-bootstrapped cross-entropy)."""

    def __init__(self, iters_per_epoch, epochs, num_classes, weight=None,
                 reduction='mean', thresh=0.7, min_kept=1, ramp_type='log_rampup'):
        self.weight = None if weight is None else jnp.asarray(weight, jnp.float32)
        self.reduction = reduction
        self.thresh = thresh
        self.min_kept = min_kept
        self.ramp_type = ramp_type
        if ramp_type is not None:
            self.rampup_func = _RAMPS[ramp_type]
            self.iters_per_epoch = iters_per_epoch
            self.num_classes = num_classes
            self.start = 1.0 / num_classes
            self.end = 0.9
            self.total_num_iters = (epochs - 0.5 * epochs) * iters_per_epoch

    def threshold(self, curr_iter, epoch):
        cur_total_iter = self.iters_per_epoch * epoch + curr_iter
        current_rampup = self.rampup_func(cur_total_iter, self.total_num_iters)
        return current_rampup * (self.end - self.start) + self.start

    def __call__(self, predict, target, ignore_index, curr_iter, epoch):
        N = predict.shape[0]
        batch_kept = self.min_kept * N
        thresh = (self.threshold(curr_iter, epoch) if self.ramp_type is not None
                  else self.thresh)

        # Heavy per-pixel work (softmax prob + CE loss) in the Pallas kernel.
        loss_flat, prob_flat = _ce_prob_pallas(predict, target, self.weight, ignore_index)

        valid = target.reshape(-1).astype(jnp.int32) != ignore_index
        P = loss_flat.shape[0]

        # k-th smallest valid prob (order statistic) — plain JAX (lax.top_k).
        k = max(1, min(batch_kept + 1, P))
        neg = jnp.where(valid, -prob_flat, -jnp.inf)
        top_neg, _ = lax.top_k(neg, k)                 # -top_neg[i] = i-th smallest valid prob
        num_valid = jnp.sum(valid.astype(jnp.int32))
        idx = jnp.clip(jnp.minimum(batch_kept, num_valid - 1), 0, k - 1)
        min_threshold = jnp.where(num_valid > 0, -jnp.take(top_neg, idx), jnp.float32(0.0))
        threshold = jnp.maximum(min_threshold, jnp.float32(thresh))

        sel = valid & (prob_flat < threshold)
        sel_sum = jnp.sum(jnp.where(sel, loss_flat, 0.0))
        n_sel = jnp.sum(sel.astype(jnp.int32)).astype(jnp.float32)

        if self.reduction == 'sum':
            return sel_sum
        elif self.reduction == 'mean':
            # torch: if no elements are selected, the 'sum' branch returns 0.0
            return jnp.where(n_sel > 0, sel_sum / n_sel, sel_sum)
        else:
            raise NotImplementedError('Reduction Error!')


# ---------------------------------------------------------------------------
# pure-JAX reference (independent path: log_softmax + take_along_axis + sort)
# ---------------------------------------------------------------------------

def _ref_abce_loss(predict, target, ignore_index, thresh_scalar, batch_kept,
                   weight=None, reduction='mean'):
    N, C, H, W = predict.shape
    x = predict.astype(jnp.float32)
    logp = jax.nn.log_softmax(x, axis=1)
    p = jnp.exp(logp)
    t = target.astype(jnp.int32)
    valid = t != ignore_index
    t_safe = jnp.where(valid, t, 0)
    p_t = jnp.take_along_axis(p, t_safe[:, None], axis=1)[:, 0]
    nll = -jnp.take_along_axis(logp, t_safe[:, None], axis=1)[:, 0]
    if weight is not None:
        nll = nll * jnp.asarray(weight, jnp.float32)[t_safe]
    nll = jnp.where(valid, nll, 0.0)

    prob_flat = p_t.reshape(-1)
    loss_flat = nll.reshape(-1)
    valid_flat = valid.reshape(-1)
    P = prob_flat.shape[0]

    sorted_p = jnp.sort(jnp.where(valid_flat, prob_flat, jnp.inf))
    V = jnp.sum(valid_flat.astype(jnp.int32))
    idx = jnp.clip(jnp.minimum(batch_kept, V - 1), 0, P - 1)
    min_thr = jnp.where(V > 0, sorted_p[idx], jnp.float32(0.0))
    thr = jnp.maximum(min_thr, jnp.float32(thresh_scalar))

    sel = valid_flat & (prob_flat < thr)
    s = jnp.sum(jnp.where(sel, loss_flat, 0.0))
    n = jnp.sum(sel.astype(jnp.float32))
    if reduction == 'sum':
        return s
    return jnp.where(n > 0, s / n, s)


if __name__ == "__main__":
    key = jax.random.PRNGKey(0)
    k1, k2 = jax.random.split(key)

    N, C, H, W = 2, 4, 16, 16
    IGNORE = 255
    predict = jax.random.normal(k1, (N, C, H, W), dtype=jnp.float32)
    target = jax.random.randint(k2, (N, H, W), 0, C, dtype=jnp.int32)
    # sprinkle some ignored labels
    target = target.at[0, 0, :4].set(IGNORE)
    target = target.at[1, 5, 3:9].set(IGNORE)

    loss_mod = AbCELoss(iters_per_epoch=100, epochs=10, num_classes=C,
                        weight=None, reduction='mean', thresh=0.7,
                        min_kept=1, ramp_type='log_rampup')

    out = loss_mod(predict, target, ignore_index=IGNORE, curr_iter=5, epoch=2)
    out = jax.block_until_ready(out)

    thresh_scalar = loss_mod.threshold(curr_iter=5, epoch=2)
    ref = _ref_abce_loss(predict, target, IGNORE, thresh_scalar,
                         batch_kept=loss_mod.min_kept * N,
                         weight=None, reduction='mean')
    ref = jax.block_until_ready(ref)

    assert bool(jnp.isfinite(out)), out
    assert jnp.allclose(out, ref, rtol=1e-5, atol=1e-5), (out, ref)

    print("KERNEL_OK")
</pallas_src>

<mosaic_0001>
module attributes {stable_mosaic.version = 11 : i64} {
  func.func @_abce_pixel_kernel(%arg0: i32, %arg1: i32, %arg2: memref<1x4x256xf32, #tpu.memory_space<vmem>>, %arg3: memref<1x1x256xi32, #tpu.memory_space<vmem>>, %arg4: memref<1x4x1xf32, #tpu.memory_space<vmem>>, %arg5: memref<1x1x256xf32, #tpu.memory_space<vmem>>, %arg6: memref<1x1x256xf32, #tpu.memory_space<vmem>>) attributes {dimension_semantics = [#tpu.dimension_semantics<parallel>, #tpu.dimension_semantics<parallel>], iteration_bounds = array<i64: 2, 1>, scalar_prefetch = 0 : i64, scratch_operands = 0 : i64, tpu.core_type = #tpu.core_type<tc>, window_params = [{transform_indices = @transform_0, window_bounds = array<i64: 1, 4, 256>}, {transform_indices = @transform_1, window_bounds = array<i64: 1, 1, 256>}, {pipeline_mode = #tpu.pipeline_mode<synchronous>, transform_indices = @transform_2, window_bounds = array<i64: 1, 4, 1>}, {transform_indices = @transform_3, window_bounds = array<i64: 1, 1, 256>}, {transform_indices = @transform_4, window_bounds = array<i64: 1, 1, 256>}]} {
    %c0 = arith.constant 0 : index
    %c0_0 = arith.constant 0 : index
    %c0_1 = arith.constant 0 : index
    %0 = vector.load %arg2[%c0, %c0_0, %c0_1] : memref<1x4x256xf32, #tpu.memory_space<vmem>>, vector<1x4x256xf32>
    %1 = vector.shape_cast %0 : vector<1x4x256xf32> to vector<4x256xf32>
    %c0_2 = arith.constant 0 : index
    %c0_3 = arith.constant 0 : index
    %c0_4 = arith.constant 0 : index
    %2 = vector.load %arg3[%c0_2, %c0_3, %c0_4] : memref<1x1x256xi32, #tpu.memory_space<vmem>>, vector<1x1x256xi32>
    %3 = vector.shape_cast %2 : vector<1x1x256xi32> to vector<1x256xi32>
    %c0_5 = arith.constant 0 : index
    %c0_6 = arith.constant 0 : index
    %c0_7 = arith.constant 0 : index
    %4 = vector.load %arg4[%c0_5, %c0_6, %c0_7] : memref<1x4x1xf32, #tpu.memory_space<vmem>>, vector<1x4x1xf32>
    %5 = vector.shape_cast %4 : vector<1x4x1xf32> to vector<4x1xf32>
    %c255_i32 = arith.constant 255 : i32
    %6 = vector.broadcast %c255_i32 : i32 to vector<1x256xi32>
    %7 = arith.cmpi eq, %3, %6 : vector<1x256xi32>
    %c0_i32 = arith.constant 0 : i32
    %8 = vector.broadcast %c0_i32 : i32 to vector<1x256xi32>
    %9 = arith.select %7, %8, %3 : vector<1x256xi1>, vector<1x256xi32>
    %cst = arith.constant dense<0xFF800000> : vector<256xf32>
    %10 = vector.multi_reduction <maximumf>, %1, %cst [0] : vector<4x256xf32> to vector<256xf32>
    %11 = vector.shape_cast %10 : vector<256xf32> to vector<1x256xf32>
    %12 = vector.broadcast %11 : vector<1x256xf32> to vector<4x256xf32>
    %13 = arith.subf %1, %12 : vector<4x256xf32>
    %14 = math.exp %13 : vector<4x256xf32>
    %cst_8 = arith.constant dense<0.000000e+00> : vector<256xf32>
    %15 = vector.multi_reduction <add>, %14, %cst_8 [0] : vector<4x256xf32> to vector<256xf32>
    %16 = vector.shape_cast %15 : vector<256xf32> to vector<1x256xf32>
    %17 = math.log %16 : vector<1x256xf32>
    %18 = arith.addf %17, %11 : vector<1x256xf32>
    %19 = tpu.iota {dimensions = array<i32: 0>} : vector<4x256xi32>
    %20 = vector.broadcast %9 : vector<1x256xi32> to vector<4x256xi32>
    %21 = arith.cmpi eq, %19, %20 : vector<4x256xi32>
    %22 = arith.extui %21 : vector<4x256xi1> to vector<4x256xi32>
    %23 = arith.sitofp %22 : vector<4x256xi32> to vector<4x256xf32>
    %24 = arith.mulf %1, %23 : vector<4x256xf32>
    %cst_9 = arith.constant dense<0.000000e+00> : vector<256xf32>
    %25 = vector.multi_reduction <add>, %24, %cst_9 [0] : vector<4x256xf32> to vector<256xf32>
    %26 = vector.shape_cast %25 : vector<256xf32> to vector<1x256xf32>
    %27 = vector.broadcast %5 : vector<4x1xf32> to vector<4x256xf32>
    %28 = arith.mulf %27, %23 : vector<4x256xf32>
    %cst_10 = arith.constant dense<0.000000e+00> : vector<256xf32>
    %29 = vector.multi_reduction <add>, %28, %cst_10 [0] : vector<4x256xf32> to vector<256xf32>
    %30 = vector.shape_cast %29 : vector<256xf32> to vector<1x256xf32>
    %c255_i32_11 = arith.constant 255 : i32
    %31 = vector.broadcast %c255_i32_11 : i32 to vector<1x256xi32>
    %32 = arith.cmpi ne, %3, %31 : vector<1x256xi32>
    %33 = arith.extui %32 : vector<1x256xi1> to vector<1x256xi32>
    %34 = arith.sitofp %33 : vector<1x256xi32> to vector<1x256xf32>
    %35 = arith.subf %18, %26 : vector<1x256xf32>
    %36 = arith.mulf %35, %30 : vector<1x256xf32>
    %37 = arith.mulf %36, %34 : vector<1x256xf32>
    %c0_12 = arith.constant 0 : index
    %c0_13 = arith.constant 0 : index
    %c0_14 = arith.constant 0 : index
    %38 = vector.load %arg5[%c0_12, %c0_13, %c0_14] : memref<1x1x256xf32, #tpu.memory_space<vmem>>, vector<1x1x256xf32>
    %39 = vector.shape_cast %38 : vector<1x1x256xf32> to vector<1x256xf32>
    %40 = vector.shape_cast %37 : vector<1x256xf32> to vector<1x1x256xf32>
    tpu.vector_store %arg5[%c0_12, %c0_13, %c0_14], %40 {strides = array<i32>} : memref<1x1x256xf32, #tpu.memory_space<vmem>>, vector<1x1x256xf32>,
    %41 = arith.subf %26, %18 : vector<1x256xf32>
    %42 = math.exp %41 : vector<1x256xf32>
    %c0_15 = arith.constant 0 : index
    %c0_16 = arith.constant 0 : index
    %c0_17 = arith.constant 0 : index
    %43 = vector.load %arg6[%c0_15, %c0_16, %c0_17] : memref<1x1x256xf32, #tpu.memory_space<vmem>>, vector<1x1x256xf32>
    %44 = vector.shape_cast %43 : vector<1x1x256xf32> to vector<1x256xf32>
    %45 = vector.shape_cast %42 : vector<1x256xf32> to vector<1x1x256xf32>
    tpu.vector_store %arg6[%c0_15, %c0_16, %c0_17], %45 {strides = array<i32>} : memref<1x1x256xf32, #tpu.memory_space<vmem>>, vector<1x1x256xf32>,
    return
  }
  func.func @transform_0(%arg0: i32, %arg1: i32) -> (i32, i32, i32) {
    %c0_i32 = arith.constant 0 : i32
    %c0_i32_0 = arith.constant 0 : i32
    return %arg0, %c0_i32, %arg1 : i32, i32, i32
  }
  func.func @transform_1(%arg0: i32, %arg1: i32) -> (i32, i32, i32) {
    %c0_i32 = arith.constant 0 : i32
    %c0_i32_0 = arith.constant 0 : i32
    return %arg0, %c0_i32, %arg1 : i32, i32, i32
  }
  func.func @transform_2(%arg0: i32, %arg1: i32) -> (i32, i32, i32) {
    %c0_i32 = arith.constant 0 : i32
    %c0_i32_0 = arith.constant 0 : i32
    %c0_i32_1 = arith.constant 0 : i32
    %c0_i32_2 = arith.constant 0 : i32
    return %c0_i32, %c0_i32_0, %c0_i32_1 : i32, i32, i32
  }
  func.func @transform_3(%arg0: i32, %arg1: i32) -> (i32, i32, i32) {
    %c0_i32 = arith.constant 0 : i32
    %c0_i32_0 = arith.constant 0 : i32
    return %arg0, %c0_i32, %arg1 : i32, i32, i32
  }
  func.func @transform_4(%arg0: i32, %arg1: i32) -> (i32, i32, i32) {
    %c0_i32 = arith.constant 0 : i32
    %c0_i32_0 = arith.constant 0 : i32
    return %arg0, %c0_i32, %arg1 : i32, i32, i32
  }
}

</mosaic_0001>

<bundles_post_ra>
// kernel: tpu_custom_call.1
= control target key start
LH: loop header
LB: loop body
LE: loop exit
PB: predicated region body
PF: predicated region fallthrough
CT: control target
= control target key end

     0   :  { %10 = vsyncpa [#allocation3], 0  ;;  %s1203_s0 = inlined_call_operand.hbm [shape: f32[2,4,256], index: 0, kind: input, shape index: {}]   ;;  %s1204_s1 = inlined_call_operand.vmem [shape: s32[2,1,256], index: 1, kind: input, shape index: {}]   ;;  %s1205_s2 = inlined_call_operand.vmem [shape: f32[1,4,1], index: 2, kind: input, shape index: {}]   ;;  %s1206_s3 = inlined_call_operand.hbm [shape: f32[2,1,256], index: 3, kind: output, shape index: {0}]   ;;  %s1207_s4 = inlined_call_operand.hbm [shape: f32[2,1,256], index: 4, kind: output, shape index: {1}]  }
   0x1   :  { %12 = vsyncpa [#allocation3 + $0x1], 0 }
   0x2   :  { %13 = vsyncpa [#allocation4], 0 }
   0x3   :  { %15 = vsyncpa [#allocation4 + $0x1], 0 }
   0x4   :  { %16 = vsyncpa [#allocation7], 0 }
   0x5   :  { %18 = vsyncpa [#allocation7 + $0x1], 0  ;;  %s918_s15 = smov 0   ;;  %s920_s16 = smov 0  }
   0x6   :  { %s922_s17 = smov 0   ;;  %s924_s18 = smov 0  }
   0x7   :  { %s926_s19 = smov 0   ;;  %s928_s20 = smov 0  }
   0x8 LB: > { %s633_s21 = sadd.s32 4294967295, %s885_s20   ;;  %s634_s22 = sadd.s32 4294967294, %s885_s20   ;;  %s885_s20 = sphi %s928_s20, %s24_s20   ;;  %s881_s19 = sphi %s926_s19, %s1225_s19   ;;  %s877_s18 = sphi %s924_s18, %s1224_s18   ;;  %s873_s17 = sphi %s922_s17, %s1223_s17   ;;  %s869_s16 = sphi %s920_s16, %s1222_s16   ;;  %s865_s15 = sphi %s918_s15, %s1221_s15  }
   0x9   : > { %s36_s23 = sadd.s32 1, %s881_s19  ;;  %s45_s24 = sadd.s32 1, %s873_s17 }
   0xa   : > { %p38_p0 = scmp.ge.s32.totalorder %s36_s23, 2  ;;  %p52_p1 = scmp.ne.s32.totalorder %s873_s17, %s869_s16 }
   0xb   : > { %p53_p2 = scmp.eq.s32.totalorder %s885_s20, 0  ;;  %p58_p3 = scmp.ne.s32.totalorder %s869_s16, %s865_s15 }
   0xc   : > { %s1227_s23 = smov (%p38_p0, %s36_s23), 0  ;;  %p59_p5 = scmp.eq.s32.totalorder %s633_s21, 0 }
   0xd   : > { %p959_p4 = por %p53_p2, %p52_p1  ;;  %s40_s26 = ssub.s32 %s881_s19, %s1227_s23 }
   0xe   : > { %p133_p6 = scmp.eq.s32.totalorder %s633_s21, 1  ;;  %p43_p7 = scmp.eq.s32.totalorder %s40_s26, 0 }
   0xf   : > { %p965_p8 = por %p59_p5, %p58_p3  ;;  %p139_p10 = scmp.eq.s32.totalorder %s634_s22, 1 }
  0x10   : > { %p969_p9 = por %p133_p6, %p52_p1  ;;  %p676_p13 = scmp.lt.s32.totalorder %s885_s20, 2 }
  0x11   : > { %s974_s29 = scalar_select %p43_p7, %s873_s17, %s45_s24  }
  0x12   : > { %s1211_s28 = scalar_select %p969_p9, 1, 0 }
  0x13   : > { %p976_p11 = por %p139_p10, %p58_p3  ;;  %s190_s5 = sand.u32 1, %s873_s17  }
  0x14   : > { %s637_s6 = sshll.u32 %s190_s5, 3  ;;  %s656_s7 = sshll.u32 %s881_s19, 7 }
  0x15   : > { %s1212_s30 = scalar_select %p976_p11, 1, 0 }
  0x16   : > { %s987_s10 = scalar_lea.hbm %s1203_s0, %s656_s7  ;;  %s194_s11 = scalar_lea.vmem [#allocation2], %s637_s6 }
  0x17   : > { %s204_s12 = sshll.u32 %s194_s11, 4  ;;  %p993_p0 = pnand %p676_p13, %p959_p4  ;;  %s989_s12 = int_to_ptr.vmem [resolvable:$true] %s204_s12 }
  0x18   : > { %s191_s14 = scalar_lea.sflag [#allocation3], %s190_s5  ;;  %s741_s21 = scalar_lea.hbm %s987_s10, 128 }
  0x19   : > { %p742_p3 = scmp.ne.s32.totalorder %s987_s10, %s741_s21  ;;  %p743_p5 = pneg %p993_p0 }
  0x1a   : > { %s746_s25 = scalar_lea.hbm %s1203_s0, 256  ;;  %p747_p4 = scmp.lt.u32.totalorder %s987_s10, %s1203_s0 }
  0x1b   : > { %p744_p6 = pnand %p743_p5, %p742_p3  ;;  %p748_p10 = scmp.lt.u32.totalorder %s746_s25, %s741_s21 }
  0x1c   : > { %p750_p12 = scmp.lt.u32.totalorder %s741_s21, %s987_s10 }
  0x1d   : > { %p745_p7 = pneg %p744_p6  ;;  %p749_p13 = por %p748_p10, %p747_p4 }
  0x1f   : > { %p751_p1 = por %p750_p12, %p749_p13 }
  0x21   : > { %p752_p2 = pnand %p751_p1, %p745_p7 }
  0x23   : > { %755 = shalt.err (!%p752_p2)
}
  0x24   : > { %s756_s5 = scalar_lea.vmem %s989_s12, 128  ;;  %s887_s7 = smov [#allocation2]  }
  0x25   : > { %p757_p3 = scmp.ne.s32.totalorder %s989_s12, %s756_s5  ;;  %s761_s8 = sshll.u32 %s887_s7, 4  ;;  %s762_s8 = int_to_ptr.vmem [resolvable:$false] %s761_s8 }
  0x26   : > { %s763_s9 = scalar_lea.vmem %s762_s8, 256  ;;  %p764_p9 = scmp.lt.s32.totalorder %s989_s12, %s762_s8 }
  0x27   : > { %p759_p6 = pnand %p757_p3, %p743_p5  ;;  %p765_p4 = scmp.lt.s32.totalorder %s763_s9, %s756_s5 }
  0x29   : > { %p760_p11 = pneg %p759_p6  ;;  %p766_p10 = por %p765_p4, %p764_p9 }
  0x2b   : > { %p767_p12 = pnand %p766_p10, %p760_p11 }
  0x2d   : > { %770 = shalt.err (!%p767_p12)
}
  0x2e   : > { %668 = dma.hbm_to_vmem [thread:$0]  (!%p993_p0), %s987_s10, 128, %s989_s12, %s191_s14  }
  0x2f   : > { %p1214_p1 = scmp.lt.s32.totalorder %s885_s20, 3  ;;  %p1215_p2 = scmp.ge.s32.totalorder %s885_s20, 1 }
  0x31   : > { %p222_p5 = pnand %p1215_p2, %p1214_p1 }
  0x32   : > { %s1029_s11 = sand.u32 (!%p222_p5), 1, %s869_s16  }
  0x33   : > { %225 = sbr.rel (%p222_p5) target bundleno = 228 (0xe4), region = 32  ;;  %s641_s21 = sshll.u32 (!%p222_p5), %s1029_s11, 3 }
  0x34   : > { %s228_s22 = scalar_lea.sflag (!%p222_p5), [#allocation3], %s1029_s11  ;;  %s231_s24 = scalar_lea.vmem (!%p222_p5), [#allocation2], %s641_s21 }
  0x3a   : > { %852 = dma.done.wait (%p965_p8), %s228_s22, 128  }
  0x3b   : > { %854 = vsyncadd (%p965_p8), %s228_s22, 4294967168  ;;  %p271_p9 = scmp.lt.s32.totalorder %s877_s18, 1  ;;  %v888_v0 = vmov 0   ;;  %vm289_vm0 = vcmask 1043456   ;;  %v283_v1 = vld [vmem:[%s1205_s2] sm:$0xf]  ;;  %v334_v5 = vlaneseq }
  0x3c   : > { %729 = vset.pattern.permute.xlu0 %v888_v0  ;;  %v281_v2 = vld [vmem:[%s231_s24] sm:$0xff]  ;;  %v889_v26 = vmov 0.0   ;;  %s642_s6 = sshll.u32 %s1029_s11, 1  ;;  %s657_s5 = sshll.u32 %s877_s18, 5 }
  0x3d   : > { %s272_s10 = scalar_select %p271_p9, %s877_s18, 1  ;;  %374 = vperm.xlu0 %729, %v283_v1   ;;  %v287_v3 = vcombine.high %v281_v2, %v281_v2  ;;  %v290_v4 = vsel %vm289_vm0, %v281_v2, -inf  ;;  %v1048_v11 = vshrl.u32 %v334_v5, 7  ;;  %vm1093_vm5 = vcmp.lt.s32.totalorder %v334_v5, 256 }
  0x3e   : > { %v291_v6 = vrot.slane %v290_v4, 4  ;;  %s268_s7 = scalar_lea.vmem [#allocation6], %s642_s6  ;;  %s1103_s22 = scalar_lea.hbm %s1207_s4, %s657_s5 }
  0x3f   : > { %s644_s12 = sshll.u32 %s272_s10, 1  ;;  %v297_v7 = vsel %vm289_vm0, %v287_v3, -inf  ;;  %v338_v16 = vsub.s32 0, %v1048_v11  ;;  %v342_v17 = vsub.s32 1, %v1048_v11  ;;  %s499_s8 = sshll.u32 %s268_s7, 4  ;;  %s1105_s8 = int_to_ptr.vmem [resolvable:$true] %s499_s8 }
  0x40   : > { %s277_s26 = scalar_lea.vmem %s1204_s1, %s644_s12  ;;  %v292_v8 = vmax.f32 %v290_v4, %v291_v6  ;;  %v298_v9 = vrot.slane %v297_v7, 4  ;;  %s467_s24 = scalar_lea.sflag [#allocation7], %s1029_s11 }
  0x41   : > { %v282_v10 = vld [vmem:[%s277_s26] sm:$0x3]  ;;  %s771_s10 = scalar_lea.vmem %s1105_s8, 32  ;;  %p1218_p11 = scmp.ne.s32.totalorder %s1211_s28, 0 }
  0x42   : > { %v293_v12 = vrot.slane %v292_v8, 2  ;;  %v299_v13 = vmax.f32 %v297_v7, %v298_v9  ;;  %vm284_vm1 = vcmp.eq.s32.totalorder %v282_v10, 255  ;;  %vm393_vm2 = vcmp.ne.s32.totalorder %v282_v10, 255  ;;  %p772_p8 = scmp.ne.s32.totalorder %s1105_s8, %s771_s10  ;;  %s891_s12 = smov [#allocation6]  }
  0x43   : > { %v285_v20 = vsel %vm284_vm1, 0, %v282_v10  ;;  %v647_v27 = vsel %vm393_vm2, 1.0, %v889_v26  ;;  %s775_s13 = sshll.u32 %s891_s12, 4  ;;  %s776_s13 = int_to_ptr.vmem [resolvable:$false] %s775_s13 }
  0x44   : > { %v294_v14 = vmax.f32 %v292_v8, %v293_v12  ;;  %v300_v15 = vrot.slane %v299_v13, 2  ;;  %v339_v24 = vrot.slane %v285_v20, %v338_v16  ;;  %v343_v25 = vrot.slane %v285_v20, %v342_v17  ;;  %p773_p0 = pnand %p772_p8, %p1218_p11  ;;  %s777_s14 = scalar_lea.vmem %s776_s13, 64 }
  0x45   : > { %v1052_v29 = vrot.slane %v647_v27, %v338_v16  ;;  %v1054_v30 = vrot.slane %v647_v27, %v342_v17  ;;  %p778_p13 = scmp.lt.s32.totalorder %s1105_s8, %s776_s13  ;;  %p779_p3 = scmp.lt.s32.totalorder %s777_s14, %s771_s10 }
  0x46   : > { %v295_v18 = vrot.slane %v294_v14, 1  ;;  %v301_v19 = vmax.f32 %v299_v13, %v300_v15  ;;  %vm344_vm3 = vcmp.eq.s32.totalorder %v1048_v11, %v339_v24  ;;  %vm345_vm4 = vcmp.eq.s32.totalorder %v1048_v11, %v343_v25  ;;  %p774_p7 = pneg %p773_p0 }
  0x47   : > { %v1058_v33 = vsel %vm344_vm3, 1.0, %v889_v26  ;;  %v1060_v34 = vsel %vm345_vm4, 1.0, %v889_v26  ;;  %p780_p6 = por %p779_p3, %p778_p13 }
  0x48   : > { %v296_v21 = vmax.f32 %v294_v14, %v295_v18  ;;  %v302_v22 = vrot.slane %v301_v19, 1  ;;  %v352_v35 = vcombine.low %v1058_v33, %v1060_v34  ;;  %v890_v18 = vmov 1966171168  }
  0x49   : > { %p781_p4 = pnand %p780_p6, %p774_p7 }
  0x4a   : > { %v303_v23 = vmax.f32 %v301_v19, %v302_v22  ;;  %v354_v36 = vmul.f32 %v352_v35, %v281_v2  ;;  %v417_v19 = vunpack.c.l.s4 %v890_v18 }
  0x4c   : > { %v306_v28 = vcombine.low %v296_v21, %v303_v23  ;;  %v356_v38 = vcombine.high %v354_v36, %v354_v36  ;;  %v358_v42 = vsel %vm289_vm0, %v354_v36, 0.0  ;;  %v418_v20 = vunpack.c.0.s8 %v417_v19 }
  0x4d   : > { %v359_v47 = vrot.slane %v358_v42, 4 }
  0x4e   : > { %v308_v31 = vsub.f32 %v281_v2, %v306_v28  ;;  %v365_v46 = vsel %vm289_vm0, %v356_v38, 0.0  ;;  %v1086_v22 = vsub.s32 %v418_v20, %v1048_v11 }
  0x4f   : > { %v366_v50 = vrot.slane %v365_v46, 4  ;;  %v360_v53 = vadd.f32 %v359_v47, %v358_v42 }
  0x50   : > { %v309_v32 = vmul.f32 1.442695, %v308_v31 }
  0x51   : > { %v367_v56 = vadd.f32 %v366_v50, %v365_v46  ;;  %v361_v59 = vrot.slane %v360_v53, 2 }
  0x52   : > { %731 = vpow2.f32 %v309_v32 }
  0x53   : > { %v368_v61 = vrot.slane %v367_v56, 2  ;;  %v362_v62 = vadd.f32 %v361_v59, %v360_v53 }
  0x55   : > { %v369_v63 = vadd.f32 %v368_v61, %v367_v56  ;;  %v363_v0 = vrot.slane %v362_v62, 1 }
  0x57   : > { %v370_v1 = vrot.slane %v369_v63, 1  ;;  %v1068_v4 = vadd.f32 %v363_v0, %v362_v62 }
  0x59   : > { %v1072_v9 = vadd.f32 %v370_v1, %v369_v63 }
  0x5c   : > { %v732_v37 = vpop.eup %731 }
  0x5d   : > { %v312_v39 = vcombine.high %v732_v37, %v732_v37  ;;  %v314_v40 = vsel %vm289_vm0, %v732_v37, 0.0 }
  0x5e   : > { %v315_v41 = vrot.slane %v314_v40, 4 }
  0x5f   : > { %v321_v43 = vsel %vm289_vm0, %v312_v39, 0.0 }
  0x60   : > { %v316_v44 = vadd.f32 %v315_v41, %v314_v40  ;;  %v322_v45 = vrot.slane %v321_v43, 4 }
  0x62   : > { %v317_v48 = vrot.slane %v316_v44, 2  ;;  %v323_v49 = vadd.f32 %v322_v45, %v321_v43 }
  0x64   : > { %v318_v51 = vadd.f32 %v317_v48, %v316_v44  ;;  %v324_v52 = vrot.slane %v323_v49, 2 }
  0x66   : > { %v319_v54 = vrot.slane %v318_v51, 1  ;;  %v325_v55 = vadd.f32 %v324_v52, %v323_v49 }
  0x68   : > { %v320_v57 = vadd.f32 %v319_v54, %v318_v51  ;;  %v326_v58 = vrot.slane %v325_v55, 1 }
  0x6a   : > { %v327_v60 = vadd.f32 %v326_v58, %v325_v55  ;;  %733 = vlog2.f32 %v320_v57 }
  0x6c   : > { %735 = vlog2.f32 %v327_v60 }
  0x74   : > { %v734_v2 = vpop.eup %733 }
  0x75   : > { %v329_v3 = vmul.f32 0.6931472, %v734_v2 }
  0x76   : > { %v736_v6 = vpop.eup %735 }
  0x77   : > { %v331_v7 = vmul.f32 0.6931472, %v736_v6  ;;  %v1070_v8 = vadd.f32 %v329_v3, %v296_v21 }
  0x79   : > { %v1074_v10 = vadd.f32 %v331_v7, %v303_v23  ;;  %v396_v12 = vsub.f32 %v1070_v8, %v1068_v4  ;;  %v436_v13 = vsub.f32 %v1068_v4, %v1070_v8 }
  0x7b   : > { %v397_v14 = vsub.f32 %v1074_v10, %v1072_v9  ;;  %v437_v15 = vsub.f32 %v1072_v9, %v1074_v10  ;;  %v438_v16 = vmul.f32 1.442695, %v436_v13 }
  0x7d   : > { %737 = vpow2.f32 %v438_v16  ;;  %v440_v17 = vmul.f32 1.442695, %v437_v15 }
  0x7f   : > { %739 = vpow2.f32 %v440_v17 }
  0x87   : > { %v738_v21 = vpop.eup %737 }
  0x89   : > { %v740_v23 = vpop.eup %739 }
  0x8a   : > { %v444_v24 = vcombine.low %v738_v21, %v740_v23 }
  0x8c   : > { %v451_v25 = vrot.slane %v444_v24, %v1086_v22 }
  0x8e   : > { %v458_v27 = vrot.slane %v451_v25, %v1086_v22 }
  0x90   : > { %460 = vst.msk [vmem:[%s268_s7] sm:$0x3] %vm1093_vm5, %v458_v27 }
  0x91   : > { %784 = shalt.err (!%p781_p4)
}
  0x92   : > { %s785_s25 = scalar_lea.hbm %s1103_s22, 32  ;;  %s789_s7 = scalar_lea.hbm %s1207_s4, 64 }
  0x93   : > { %p786_p10 = scmp.ne.s32.totalorder %s1103_s22, %s785_s25  ;;  %p790_p2 = scmp.lt.u32.totalorder %s1103_s22, %s1207_s4 }
  0x94   : > { %p791_p5 = scmp.lt.u32.totalorder %s789_s7, %s785_s25  ;;  %p793_p8 = scmp.lt.u32.totalorder %s785_s25, %s1103_s22 }
  0x95   : > { %p787_p12 = pnand %p786_p10, %p1218_p11 }
  0x96   : > { %p792_p9 = por %p791_p5, %p790_p2 }
  0x97   : > { %p788_p1 = pneg %p787_p12 }
  0x98   : > { %p794_p0 = por %p793_p8, %p792_p9 }
  0x9a   : > { %p795_p7 = pnand %p794_p0, %p788_p1 }
  0x9c   : > { %798 = shalt.err (!%p795_p7)
}
  0x9d   : > { %662 = dma.vmem_to_hbm [thread:$0]  (%p1218_p11), %s1105_s8, 32, %s1103_s22, %s467_s24  }
  0x9e   : > { %s261_s8 = scalar_lea.vmem [#allocation5], %s642_s6  ;;  %s1152_s12 = scalar_lea.hbm %s1206_s3, %s657_s5 }
  0x9f   : > { %s483_s22 = sshll.u32 %s261_s8, 4  ;;  %s462_s6 = scalar_lea.sflag [#allocation4], %s1029_s11  ;;  %s1154_s22 = int_to_ptr.vmem [resolvable:$true] %s483_s22 }
  0xa0   : > { %s799_s13 = scalar_lea.vmem %s1154_s22, 32  ;;  %s892_s18 = smov [#allocation5]  }
  0xa1   : > { %p800_p13 = scmp.ne.s32.totalorder %s1154_s22, %s799_s13  ;;  %s803_s14 = sshll.u32 %s892_s18, 4  ;;  %s804_s14 = int_to_ptr.vmem [resolvable:$false] %s803_s14 }
  0xa2   : > { %s805_s25 = scalar_lea.vmem %s804_s14, 64  ;;  %p806_p4 = scmp.lt.s32.totalorder %s1154_s22, %s804_s14 }
  0xa3   : > { %p801_p3 = pnand %p800_p13, %p1218_p11  ;;  %p807_p10 = scmp.lt.s32.totalorder %s805_s25, %s799_s13 }
  0xa5   : > { %p802_p6 = pneg %p801_p3  ;;  %p808_p12 = por %p807_p10, %p806_p4 }
  0xa7   : > { %p809_p1 = pnand %p808_p12, %p802_p6 }
  0xbc   : > { %v375_v5 = vpop.permute.xlu0 %374 }
  0xbd   : > { %v377_v11 = vmul.f32 %v1058_v33, %v375_v5  ;;  %v378_v28 = vmul.f32 %v1060_v34, %v375_v5 }
  0xbf   : > { %v379_v31 = vsel %vm289_vm0, %v377_v11, 0.0  ;;  %v386_v32 = vsel %vm289_vm0, %v378_v28, 0.0 }
  0xc0   : > { %v380_v35 = vrot.slane %v379_v31, 4  ;;  %v387_v36 = vrot.slane %v386_v32, 4 }
  0xc2   : > { %v381_v37 = vadd.f32 %v380_v35, %v379_v31  ;;  %v388_v38 = vadd.f32 %v387_v36, %v386_v32 }
  0xc4   : > { %v382_v39 = vrot.slane %v381_v37, 2  ;;  %v389_v40 = vrot.slane %v388_v38, 2 }
  0xc6   : > { %v383_v41 = vadd.f32 %v382_v39, %v381_v37  ;;  %v390_v42 = vadd.f32 %v389_v40, %v388_v38 }
  0xc8   : > { %v384_v43 = vrot.slane %v383_v41, 1  ;;  %v391_v44 = vrot.slane %v390_v42, 1 }
  0xca   : > { %v385_v33 = vadd.f32 %v384_v43, %v383_v41  ;;  %v392_v45 = vadd.f32 %v391_v44, %v390_v42 }
  0xcc   : > { %v398_v34 = vmul.f32 %v396_v12, %v385_v33  ;;  %v399_v46 = vmul.f32 %v397_v14, %v392_v45 }
  0xce   : > { %v411_v47 = vmul.f32 %v1052_v29, %v398_v34  ;;  %v412_v48 = vmul.f32 %v1054_v30, %v399_v46 }
  0xd0   : > { %v415_v49 = vcombine.low %v411_v47, %v412_v48 }
  0xd2   : > { %v422_v50 = vrot.slane %v415_v49, %v1086_v22 }
  0xd4   : > { %v429_v51 = vrot.slane %v422_v50, %v1086_v22 }
  0xd6   : > { %435 = vst.msk [vmem:[%s261_s8] sm:$0x3] %vm1093_vm5, %v429_v51 }
  0xd7   : > { %812 = shalt.err (!%p809_p1)
}
  0xd8   : > { %s813_s11 = scalar_lea.hbm %s1152_s12, 32  ;;  %s817_s26 = scalar_lea.hbm %s1206_s3, 64 }
  0xd9   : > { %p814_p2 = scmp.ne.s32.totalorder %s1152_s12, %s813_s11  ;;  %p818_p8 = scmp.lt.u32.totalorder %s1152_s12, %s1206_s3 }
  0xda   : > { %p819_p0 = scmp.lt.u32.totalorder %s817_s26, %s813_s11  ;;  %p821_p13 = scmp.lt.u32.totalorder %s813_s11, %s1152_s12 }
  0xdb   : > { %p815_p5 = pnand %p814_p2, %p1218_p11 }
  0xdc   : > { %p820_p7 = por %p819_p0, %p818_p8 }
  0xdd   : > { %p816_p9 = pneg %p815_p5 }
  0xde   : > { %p822_p3 = por %p821_p13, %p820_p7 }
  0xe0   : > { %p823_p6 = pnand %p822_p3, %p816_p9 }
  0xe2   : > { %826 = shalt.err (!%p823_p6)
}
  0xe3   : > { %661 = dma.vmem_to_hbm [thread:$0]  (%p1218_p11), %s1154_s22, 32, %s1152_s12, %s462_s6  }
  0xe4 PF: > { %s511_s21 = sand.u32 1, %s865_s15   ;;  %p1219_p4 = scmp.ne.s32.totalorder %s1212_s30, 0 }
  0xe5   : > { %p1220_p10 = scmp.ge.s32.totalorder %s885_s20, 2  ;;  %s512_s8 = scalar_lea.sflag [#allocation4], %s511_s21 }
  0xe7   : > { %p670_p12 = pnand %p1220_p10, %p1219_p4 }
  0xe9   : > { %856 = dma.done.wait (!%p670_p12), %s512_s8, 32  }
  0xea   : > { %858 = vsyncadd (!%p670_p12), %s512_s8, 4294967264  ;;  %s521_s24 = scalar_lea.sflag [#allocation7], %s511_s21 }
  0xeb   : > { %860 = dma.done.wait (!%p670_p12), %s521_s24, 32  }
  0xec   : > { %862 = vsyncadd (!%p670_p12), %s521_s24, 4294967264  ;;  %s24_s20 = sadd.s32 1, %s885_s20   ;;  %s1221_s15 = smov %s869_s16 }
  0xed   : > { %p21_p1 = scmp.ge.s32.totalorder %s24_s20, 4   ;;  %s1222_s16 = smov %s873_s17 }
  0xee   : > { %s1223_s17 = smov %s974_s29  ;;  %s1224_s18 = smov %s881_s19 }
  0xef   : > { %s1225_s19 = smov %s1227_s23  ;;  %23 = sbr.rel (!%p21_p1) target bundleno = 8 (0x8), region = 97 }
  0xf6   :  { %526 = vsyncpa [#allocation3], 1 }
  0xf7   :  { %528 = vsyncpa [#allocation3 + $0x1], 1 }
  0xf8   :  { %529 = vsyncpa [#allocation4], 1 }
  0xf9   :  { %531 = vsyncpa [#allocation4 + $0x1], 1 }
  0xfa   :  { %532 = vsyncpa [#allocation7], 1 }
  0xfb   :  { %534 = vsyncpa [#allocation7 + $0x1], 1 }

</bundles_post_ra>
